<compile_context>
chip_gen: v7x
topology: tpu7x:2x2x1
jax: 0.10.0
libtpu: 0.0.40
codegen_flags: <defaults>
</compile_context>

<pallas_src>
import functools

import jax
import jax.numpy as jnp
from jax.experimental import pallas as pl
from jax.experimental.pallas import tpu as pltpu
import numpy as np


def _round_up(x, m):
    return (x + m - 1) // m * m


# ----------------------------------------------------------------------------
# Pallas kernel: 3 matmuls + ReLU + ReLU + Tanh, one batch tile per grid step
# ----------------------------------------------------------------------------
def policy_kernel(x_ref, w1_ref, b1_ref, w2_ref, b2_ref, w3_ref, b3_ref,
                  mean_ref):
    x = x_ref[...]

    # Linear(state_dim -> 128) + ReLU   (f32 accumulation on the MXU)
    h1 = jnp.dot(x, w1_ref[...], preferred_element_type=jnp.float32) + b1_ref[...]
    h1 = jnp.maximum(h1, 0.0)

    # Linear(128 -> 64) + ReLU
    h2 = jnp.dot(h1.astype(w2_ref.dtype), w2_ref[...],
                 preferred_element_type=jnp.float32) + b2_ref[...]
    h2 = jnp.maximum(h2, 0.0)

    # Linear(64 -> A_pad) + Tanh  (A_pad is lane-dense; pad cols are zeros)
    mean = jnp.tanh(
        jnp.dot(h2.astype(w3_ref.dtype), w3_ref[...],
                preferred_element_type=jnp.float32) + b3_ref[...]
    )
    mean_ref[...] = mean.astype(mean_ref.dtype)


# ----------------------------------------------------------------------------
# Wrapper: batch tiling, lane padding of the output head, std outside kernel
# ----------------------------------------------------------------------------
def policy_forward(state, params, *, tb=1024, mm_dtype=jnp.float32):
    """Returns (action_mean, action_std) — the parameters of the Normal dist."""
    w1, b1, w2, b2, w3, b3, logstd = params
    B, S = state.shape
    H1 = w1.shape[1]
    H2 = w2.shape[1]
    A = w3.shape[1]

    # Lane-dense output: pad the last Linear to a multiple of 128 lanes.
    A_pad = _round_up(max(A, 128), 128)
    w3p = jnp.zeros((H2, A_pad), w3.dtype).at[:, :A].set(w3)
    b3p = jnp.zeros((1, A_pad), b3.dtype).at[:, :A].set(b3)

    # Batch tiling: TB rows per grid step (multiple of 8 for f32 sublanes).
    TB = min(int(tb), _round_up(B, 8))
    TB = _round_up(TB, 8)
    Bp = _round_up(B, TB)
    x = state
    if Bp != B:
        x = jnp.pad(x, ((0, Bp - B), (0, 0)))

    # Optional bf16 matmul inputs (v6e/v7x MXU + halved state-DMA bytes).
    if mm_dtype != jnp.float32:
        x = x.astype(mm_dtype)
        w1 = w1.astype(mm_dtype)
        w2 = w2.astype(mm_dtype)
        w3p = w3p.astype(mm_dtype)

    grid = (Bp // TB,)
    mean_padded = pl.pallas_call(
        policy_kernel,
        out_shape=jax.ShapeDtypeStruct((Bp, A_pad), jnp.float32),
        grid=grid,
        in_specs=[
            pl.BlockSpec((TB, S), lambda i: (i, 0)),      # state: streamed per tile
            pl.BlockSpec((S, H1), lambda i: (0, 0)),      # weights / biases:
            pl.BlockSpec((1, H1), lambda i: (0, 0)),      #   constant index_map ->
            pl.BlockSpec((H1, H2), lambda i: (0, 0)),     #   resident in VMEM
            pl.BlockSpec((1, H2), lambda i: (0, 0)),
            pl.BlockSpec((H2, A_pad), lambda i: (0, 0)),
            pl.BlockSpec((1, A_pad), lambda i: (0, 0)),
        ],
        out_specs=pl.BlockSpec((TB, A_pad), lambda i: (i, 0)),
        compiler_params=pltpu.CompilerParams(
            dimension_semantics=("parallel",)),
    )(x, w1, b1, w2, b2, w3p, b3p)

    mean = mean_padded[:B, :A]
    # action_std does not depend on state -> plain JAX, no kernel HBM traffic.
    std = jnp.broadcast_to(jnp.exp(logstd), (B, A))
    return mean, std


# ----------------------------------------------------------------------------
# Deterministic parameter init (mimics layer_init: orthogonal * std, bias = 0)
# ----------------------------------------------------------------------------
def orthogonal_init(key, in_dim, out_dim, std):
    n = max(in_dim, out_dim)
    a = jax.random.normal(key, (n, n), dtype=jnp.float32)
    q, r = jnp.linalg.qr(a)
    q = q * jnp.sign(jnp.diag(r))[None, :]
    # stored as [in_features, out_features] so the kernel computes x @ W
    return (std * q[:in_dim, :out_dim]).astype(jnp.float32)


def init_policy_params(key, state_dim, action_dim):
    k1, k2, k3 = jax.random.split(key, 3)
    s2 = float(np.sqrt(2.0))
    w1 = orthogonal_init(k1, state_dim, 128, s2)
    b1 = jnp.zeros((1, 128), jnp.float32)
    w2 = orthogonal_init(k2, 128, 64, s2)
    b2 = jnp.zeros((1, 64), jnp.float32)
    w3 = orthogonal_init(k3, 64, action_dim, 0.01)
    b3 = jnp.zeros((1, action_dim), jnp.float32)
    # actor_logstd = log(ones(action_dim)) = zeros
    logstd = jnp.zeros((1, action_dim), jnp.float32)
    return (w1, b1, w2, b2, w3, b3, logstd)


# ----------------------------------------------------------------------------
# Pure-JAX reference for a correctness check
# ----------------------------------------------------------------------------
def policy_forward_ref(state, params):
    w1, b1, w2, b2, w3, b3, logstd = params
    hi = jax.lax.Precision.HIGHEST
    h1 = jnp.maximum(jnp.dot(state, w1, precision=hi) + b1, 0.0)
    h2 = jnp.maximum(jnp.dot(h1, w2, precision=hi) + b2, 0.0)
    mean = jnp.tanh(jnp.dot(h2, w3, precision=hi) + b3)
    std = jnp.broadcast_to(jnp.exp(logstd), mean.shape)
    return mean, std


if __name__ == "__main__":
    key = jax.random.PRNGKey(0)
    k_params, k_state = jax.random.split(key)

    batch, state_dim, action_dim = 20, 16, 6
    params = init_policy_params(k_params, state_dim, action_dim)
    state = jax.random.normal(k_state, (batch, state_dim), dtype=jnp.float32)

    mean_ref, std_ref = policy_forward_ref(state, params)

    # Default (single-tile) path.
    mean, std = policy_forward(state, params)
    jax.block_until_ready((mean, std))
    np.testing.assert_allclose(np.asarray(mean), np.asarray(mean_ref),
                               rtol=1e-4, atol=1e-5)
    np.testing.assert_allclose(np.asarray(std), np.asarray(std_ref),
                               rtol=1e-6, atol=1e-6)

    # Multi-step grid path (tb=8 -> 3 batch tiles with padding of the last one).
    mean2, std2 = policy_forward(state, params, tb=8)
    jax.block_until_ready((mean2, std2))
    np.testing.assert_allclose(np.asarray(mean2), np.asarray(mean_ref),
                               rtol=1e-4, atol=1e-5)
    np.testing.assert_allclose(np.asarray(std2), np.asarray(std_ref),
                               rtol=1e-6, atol=1e-6)

    # TODO(synk): on v6e/v7x call policy_forward(..., mm_dtype=jnp.bfloat16)
    # for the bf16-MXU / half-DMA path (kept off here so the f32 reference
    # comparison stays tight).

    print("KERNEL_OK")
</pallas_src>

<mosaic_0001>
module attributes {stable_mosaic.version = 11 : i64} {
  func.func @policy_kernel(%arg0: i32, %arg1: memref<24x16xf32, #tpu.memory_space<vmem>>, %arg2: memref<16x128xf32, #tpu.memory_space<vmem>>, %arg3: memref<1x128xf32, #tpu.memory_space<vmem>>, %arg4: memref<128x64xf32, #tpu.memory_space<vmem>>, %arg5: memref<1x64xf32, #tpu.memory_space<vmem>>, %arg6: memref<64x128xf32, #tpu.memory_space<vmem>>, %arg7: memref<1x128xf32, #tpu.memory_space<vmem>>, %arg8: memref<24x128xf32, #tpu.memory_space<vmem>>) attributes {dimension_semantics = [#tpu.dimension_semantics<parallel>], iteration_bounds = array<i64: 1>, scalar_prefetch = 0 : i64, scratch_operands = 0 : i64, tpu.core_type = #tpu.core_type<tc>, window_params = [{transform_indices = @transform_0, window_bounds = array<i64: 24, 16>}, {pipeline_mode = #tpu.pipeline_mode<synchronous>, transform_indices = @transform_1, window_bounds = array<i64: 16, 128>}, {pipeline_mode = #tpu.pipeline_mode<synchronous>, transform_indices = @transform_2, window_bounds = array<i64: 1, 128>}, {pipeline_mode = #tpu.pipeline_mode<synchronous>, transform_indices = @transform_3, window_bounds = array<i64: 128, 64>}, {pipeline_mode = #tpu.pipeline_mode<synchronous>, transform_indices = @transform_4, window_bounds = array<i64: 1, 64>}, {pipeline_mode = #tpu.pipeline_mode<synchronous>, transform_indices = @transform_5, window_bounds = array<i64: 64, 128>}, {pipeline_mode = #tpu.pipeline_mode<synchronous>, transform_indices = @transform_6, window_bounds = array<i64: 1, 128>}, {transform_indices = @transform_7, window_bounds = array<i64: 24, 128>}]} {
    %c0 = arith.constant 0 : index
    %c0_0 = arith.constant 0 : index
    %0 = vector.load %arg1[%c0, %c0_0] : memref<24x16xf32, #tpu.memory_space<vmem>>, vector<24x16xf32>
    %c0_1 = arith.constant 0 : index
    %c0_2 = arith.constant 0 : index
    %1 = vector.load %arg2[%c0_1, %c0_2] : memref<16x128xf32, #tpu.memory_space<vmem>>, vector<16x128xf32>
    %cst = arith.constant dense<0.000000e+00> : vector<24x128xf32>
    %2 = tpu.matmul %0, %1, %cst {dimension_numbers = #tpu.dot_dimension_numbers<[1], [0], [0], [1], [0, 0, 1, 1], [], []>} : vector<24x16xf32>, vector<16x128xf32>, vector<24x128xf32> -> vector<24x128xf32>
    %c0_3 = arith.constant 0 : index
    %c0_4 = arith.constant 0 : index
    %3 = vector.load %arg3[%c0_3, %c0_4] : memref<1x128xf32, #tpu.memory_space<vmem>>, vector<1x128xf32>
    %4 = vector.broadcast %3 : vector<1x128xf32> to vector<24x128xf32>
    %5 = arith.addf %2, %4 : vector<24x128xf32>
    %cst_5 = arith.constant 0.000000e+00 : f32
    %6 = vector.broadcast %cst_5 : f32 to vector<24x128xf32>
    %7 = arith.maximumf %5, %6 : vector<24x128xf32>
    %c0_6 = arith.constant 0 : index
    %c0_7 = arith.constant 0 : index
    %8 = vector.load %arg4[%c0_6, %c0_7] : memref<128x64xf32, #tpu.memory_space<vmem>>, vector<128x64xf32>
    %cst_8 = arith.constant dense<0.000000e+00> : vector<24x64xf32>
    %9 = tpu.matmul %7, %8, %cst_8 {dimension_numbers = #tpu.dot_dimension_numbers<[1], [0], [0], [1], [0, 0, 1, 1], [], []>} : vector<24x128xf32>, vector<128x64xf32>, vector<24x64xf32> -> vector<24x64xf32>
    %c0_9 = arith.constant 0 : index
    %c0_10 = arith.constant 0 : index
    %10 = vector.load %arg5[%c0_9, %c0_10] : memref<1x64xf32, #tpu.memory_space<vmem>>, vector<1x64xf32>
    %11 = vector.broadcast %10 : vector<1x64xf32> to vector<24x64xf32>
    %12 = arith.addf %9, %11 : vector<24x64xf32>
    %cst_11 = arith.constant 0.000000e+00 : f32
    %13 = vector.broadcast %cst_11 : f32 to vector<24x64xf32>
    %14 = arith.maximumf %12, %13 : vector<24x64xf32>
    %c0_12 = arith.constant 0 : index
    %c0_13 = arith.constant 0 : index
    %15 = vector.load %arg6[%c0_12, %c0_13] : memref<64x128xf32, #tpu.memory_space<vmem>>, vector<64x128xf32>
    %cst_14 = arith.constant dense<0.000000e+00> : vector<24x128xf32>
    %16 = tpu.matmul %14, %15, %cst_14 {dimension_numbers = #tpu.dot_dimension_numbers<[1], [0], [0], [1], [0, 0, 1, 1], [], []>} : vector<24x64xf32>, vector<64x128xf32>, vector<24x128xf32> -> vector<24x128xf32>
    %c0_15 = arith.constant 0 : index
    %c0_16 = arith.constant 0 : index
    %17 = vector.load %arg7[%c0_15, %c0_16] : memref<1x128xf32, #tpu.memory_space<vmem>>, vector<1x128xf32>
    %18 = vector.broadcast %17 : vector<1x128xf32> to vector<24x128xf32>
    %19 = arith.addf %16, %18 : vector<24x128xf32>
    %20 = math.tanh %19 : vector<24x128xf32>
    %c0_17 = arith.constant 0 : index
    %c0_18 = arith.constant 0 : index
    %21 = vector.load %arg8[%c0_17, %c0_18] : memref<24x128xf32, #tpu.memory_space<vmem>>, vector<24x128xf32>
    tpu.vector_store %arg8[%c0_17, %c0_18], %20 {strides = array<i32>} : memref<24x128xf32, #tpu.memory_space<vmem>>, vector<24x128xf32>,
    return
  }
  func.func @transform_0(%arg0: i32) -> (i32, i32) {
    %c0_i32 = arith.constant 0 : i32
    %c0_i32_0 = arith.constant 0 : i32
    return %arg0, %c0_i32 : i32, i32
  }
  func.func @transform_1(%arg0: i32) -> (i32, i32) {
    %c0_i32 = arith.constant 0 : i32
    %c0_i32_0 = arith.constant 0 : i32
    %c0_i32_1 = arith.constant 0 : i32
    return %c0_i32, %c0_i32_0 : i32, i32
  }
  func.func @transform_2(%arg0: i32) -> (i32, i32) {
    %c0_i32 = arith.constant 0 : i32
    %c0_i32_0 = arith.constant 0 : i32
    %c0_i32_1 = arith.constant 0 : i32
    return %c0_i32, %c0_i32_0 : i32, i32
  }
  func.func @transform_3(%arg0: i32) -> (i32, i32) {
    %c0_i32 = arith.constant 0 : i32
    %c0_i32_0 = arith.constant 0 : i32
    %c0_i32_1 = arith.constant 0 : i32
    return %c0_i32, %c0_i32_0 : i32, i32
  }
  func.func @transform_4(%arg0: i32) -> (i32, i32) {
    %c0_i32 = arith.constant 0 : i32
    %c0_i32_0 = arith.constant 0 : i32
    %c0_i32_1 = arith.constant 0 : i32
    return %c0_i32, %c0_i32_0 : i32, i32
  }
  func.func @transform_5(%arg0: i32) -> (i32, i32) {
    %c0_i32 = arith.constant 0 : i32
    %c0_i32_0 = arith.constant 0 : i32
    %c0_i32_1 = arith.constant 0 : i32
    return %c0_i32, %c0_i32_0 : i32, i32
  }
  func.func @transform_6(%arg0: i32) -> (i32, i32) {
    %c0_i32 = arith.constant 0 : i32
    %c0_i32_0 = arith.constant 0 : i32
    %c0_i32_1 = arith.constant 0 : i32
    return %c0_i32, %c0_i32_0 : i32, i32
  }
  func.func @transform_7(%arg0: i32) -> (i32, i32) {
    %c0_i32 = arith.constant 0 : i32
    %c0_i32_0 = arith.constant 0 : i32
    return %arg0, %c0_i32 : i32, i32
  }
}

</mosaic_0001>

<bundles_post_ra>
// kernel: tpu_custom_call.1
= control target key start
LH: loop header
LB: loop body
LE: loop exit
PB: predicated region body
PF: predicated region fallthrough
CT: control target
= control target key end

     0   :  { %v563_v2 = vmov 0.0|0.0   ;;  %vm564_vm0 = vmmov 0   ;;  %v565_v4 = vmov 0.0   ;;  %vm39_vm1 = vcmask 130048   ;;  %s751_s0 = inlined_call_operand.vmem [shape: f32[24,16], index: 0, kind: input, shape index: {}]   ;;  %s752_s1 = inlined_call_operand.vmem [shape: f32[16,128], index: 1, kind: input, shape index: {}]   ;;  %s753_s2 = inlined_call_operand.vmem [shape: f32[1,128], index: 2, kind: input, shape index: {}]   ;;  %s754_s3 = inlined_call_operand.vmem [shape: f32[128,64], index: 3, kind: input, shape index: {}]   ;;  %s755_s4 = inlined_call_operand.vmem [shape: f32[1,64], index: 4, kind: input, shape index: {}]   ;;  %s756_s5 = inlined_call_operand.vmem [shape: f32[64,128], index: 5, kind: input, shape index: {}]   ;;  %s757_s6 = inlined_call_operand.vmem [shape: f32[1,128], index: 6, kind: input, shape index: {}]   ;;  %s758_s7 = inlined_call_operand.hbm [shape: f32[24,128], index: 7, kind: output, shape index: {}]  }
   0x1   :  { %v30_v0 = vld [vmem:[%s752_s1] sm:$0xff]  ;;  %v31_v1 = vld [vmem:[%s752_s1 + $0x8] sm:$0xff]  ;;  %488 = vmatprep.subr.bf16.mxu0 %v563_v2  ;;  %413 = vmatprep.mubr.msk.f32.mxu0 %vm564_vm0, %v565_v4  ;;  %v134_v7 = vld [vmem:[%s754_s3 + $0x10] sm:$0xff] }
   0x2   :  { %v489_v3 = vpack.c.bf16 %v31_v1, %v30_v0  ;;  %v132_v5 = vld [vmem:[%s754_s3] sm:$0xff]  ;;  %491 = vmatprep.subr.bf16.mxu1 %v563_v2  ;;  %v133_v6 = vld [vmem:[%s754_s3 + $0x8] sm:$0xff]  ;;  %v135_v8 = vld [vmem:[%s754_s3 + $0x18] sm:$0xff]  ;;  %454 = vmatprep.mubr.msk.f32.mxu1 %vm564_vm0, %v565_v4 }
   0x3   :  { %v27_v9 = vld [vmem:[%s751_s0] sm:$0xff]  ;;  %v492_v10 = vpack.c.bf16 %v133_v6, %v132_v5  ;;  %v495_v11 = vpack.c.bf16 %v135_v8, %v134_v7  ;;  %v137_v13 = vld [vmem:[%s754_s3 + $0x28] sm:$0xff] }
   0x4   :  { %490 = vmatpush3.bf16.msra.mxu0 %v489_v3  ;;  %v136_v12 = vld [vmem:[%s754_s3 + $0x20] sm:$0xff] }
   0x5   :  { %515 = vmatprep.subr.bf16.mxu0 %v563_v2  ;;  %493 = vmatpush3.bf16.msra.mxu1 %v492_v10 }
   0x6   :  { %494 = vmatprep.subr.bf16.mxu1 %v563_v2 }
   0x7   :  { %414 = vmatmul.mubr.msk.f32.vlgmr.msra.gmra.mrb[0].mxu0 %vm39_vm1, %v27_v9 }
   0x8   :  { %12 = vsyncpa [#allocation3], 0  ;;  %416 = vmatprep.mubr.msk.f32.mxu0 %vm564_vm0, %v565_v4  ;;  %v28_v14 = vld [vmem:[%s751_s0 + $0x8] sm:$0xff]  ;;  %v498_v15 = vpack.c.bf16 %v137_v13, %v136_v12  ;;  %v138_v16 = vld [vmem:[%s754_s3 + $0x30] sm:$0xff]  ;;  %vm253_vm2 = vcmask 523264   ;;  %s566_s10 = smov [#allocation2]  }
   0x9   :  { %496 = vmatpush3.bf16.msra.mxu1 %v495_v11  ;;  %v139_v17 = vld [vmem:[%s754_s3 + $0x38] sm:$0xff]  ;;  %v29_v18 = vld [vmem:[%s751_s0 + $0x10] sm:$0xff]  ;;  %v140_v20 = vld [vmem:[%s754_s3 + $0x40] sm:$0xff]  ;;  %s354_s11 = sshll.u32 %s566_s10, 4  ;;  %s355_s11 = int_to_ptr.vmem [resolvable:$true] %s354_s11 }
   0xa   :  { %497 = vmatprep.subr.bf16.mxu1 %v563_v2  ;;  %v501_v19 = vpack.c.bf16 %v139_v17, %v138_v16  ;;  %v141_v21 = vld [vmem:[%s754_s3 + $0x48] sm:$0xff]  ;;  %v142_v23 = vld [vmem:[%s754_s3 + $0x50] sm:$0xff]  ;;  %v143_v24 = vld [vmem:[%s754_s3 + $0x58] sm:$0xff]  ;;  %p544_p1 = scmp.lt.s32.totalorder %s355_s11, %s355_s11 }
   0xb   :  { %417 = vmatmul.mubr.msk.f32.gmra.mrb[2].mxu0 %vm39_vm1, %v28_v14  ;;  %v504_v22 = vpack.c.bf16 %v141_v21, %v140_v20  ;;  %v507_v25 = vpack.c.bf16 %v143_v24, %v142_v23  ;;  %v144_v26 = vld [vmem:[%s754_s3 + $0x60] sm:$0xff]  ;;  %v145_v27 = vld [vmem:[%s754_s3 + $0x68] sm:$0xff]  ;;  %v146_v29 = vld [vmem:[%s754_s3 + $0x70] sm:$0xff] }
   0xc   :  { %419 = vmatprep.mubr.msk.f32.mxu0 %vm564_vm0, %v565_v4  ;;  %v510_v28 = vpack.c.bf16 %v145_v27, %v144_v26  ;;  %v147_v30 = vld [vmem:[%s754_s3 + $0x78] sm:$0xff]  ;;  %v238_v32 = vld [vmem:[%s756_s5] sm:$0xff]  ;;  %v239_v33 = vld [vmem:[%s756_s5 + $0x8] sm:$0xff] }
   0xd   :  { %499 = vmatpush3.bf16.msra.mxu1 %v498_v15  ;;  %v513_v31 = vpack.c.bf16 %v147_v30, %v146_v29  ;;  %v240_v34 = vld [vmem:[%s756_s5 + $0x10] sm:$0xff]  ;;  %v516_v35 = vpack.c.bf16 %v239_v33, %v238_v32  ;;  %v241_v36 = vld [vmem:[%s756_s5 + $0x18] sm:$0xff]  ;;  %v242_v38 = vld [vmem:[%s756_s5 + $0x20] sm:$0xff] }
   0xe   :  { %500 = vmatprep.subr.bf16.mxu1 %v563_v2  ;;  %v519_v37 = vpack.c.bf16 %v241_v36, %v240_v34  ;;  %v243_v39 = vld [vmem:[%s756_s5 + $0x28] sm:$0xff]  ;;  %v365_v41 = vld [vmem:[%s753_s2] ss:$0 sm:$0xff]  ;;  %v244_v54 = vld [vmem:[%s756_s5 + $0x30] sm:$0xff] }
   0xf   :  { %420 = vmatmul.mubr.msk.f32.gmra.mrb[4].mxu0 %vm39_vm1, %v29_v18  ;;  %v522_v40 = vpack.c.bf16 %v243_v39, %v242_v38  ;;  %v245_v55 = vld [vmem:[%s756_s5 + $0x38] sm:$0xff]  ;;  %v369_v57 = vld [vmem:[%s755_s4] ss:$0 sm:$0xff] }
  0x10   :  { %479 = vmatprep.mubr.msk.f32.mxu0 %vm564_vm0, %v565_v4  ;;  %517 = vmatpush3.bf16.msra.mxu0 %v516_v35  ;;  %v525_v56 = vpack.c.bf16 %v245_v55, %v244_v54  ;;  %v370_v7 = vld [vmem:[%s757_s6] ss:$0 sm:$0xff]  ;;  %s539_s6 = scalar_lea.vmem %s355_s11, 384 }
  0x11   :  { %502 = vmatpush3.bf16.msra.mxu1 %v501_v19  ;;  %518 = vmatprep.subr.bf16.mxu0 %v563_v2  ;;  %p540_p0 = scmp.ne.s32.totalorder %s355_s11, %s539_s6  ;;  %p545_p2 = scmp.lt.s32.totalorder %s539_s6, %s539_s6 }
  0x12   :  { %503 = vmatprep.subr.bf16.mxu1 %v563_v2 }
  0x13   :  { %p546_p3 = por %p545_p2, %p544_p1 }
  0x14   :  { %520 = vmatpush3.bf16.msra.mxu0 %v519_v37 }
  0x15   :  { %505 = vmatpush3.bf16.msra.mxu1 %v504_v22  ;;  %521 = vmatprep.subr.bf16.mxu0 %v563_v2  ;;  %p547_p4 = pnand %p546_p3, %p540_p0 }
  0x16   :  { %506 = vmatprep.subr.bf16.mxu1 %v563_v2 }
  0x18   :  { %523 = vmatpush3.bf16.msra.mxu0 %v522_v40 }
  0x19   :  { %508 = vmatpush3.bf16.msra.mxu1 %v507_v25  ;;  %524 = vmatprep.subr.bf16.mxu0 %v563_v2 }
  0x1a   :  { %509 = vmatprep.subr.bf16.mxu1 %v563_v2 }
  0x1c   :  { %526 = vmatpush3.bf16.msra.mxu0 %v525_v56 }
  0x1d   :  { %511 = vmatpush3.bf16.msra.mxu1 %v510_v28 }
  0x1e   :  { %512 = vmatprep.subr.bf16.mxu1 %v563_v2 }
  0x21   :  { %514 = vmatpush3.bf16.msra.mxu1 %v513_v31 }
  0xda   :  { %v115_v42 = vpop.f32.mrb[0].mxu0 }
  0xdb   :  { %v116_v43 = vadd.f32 %v365_v41, %v115_v42  ;;  %v415_v44 = vpop.f32.mrb[1].mxu0 }
  0xdd   :  { %v129_v45 = vmax.f32 %v116_v43, 0.0 }
  0xde   :  { %v120_v46 = vpop.f32.mrb[2].mxu0 }
  0xdf   :  { %v121_v47 = vadd.f32 %v365_v41, %v120_v46  ;;  %v418_v48 = vpop.f32.mrb[3].mxu0  ;;  %455 = vmatmul.mubr.f32.vlgmr.msra.gmra.mrb[0].mxu1 %v129_v45 }
  0xe0   :  { %457 = vmatprep.mubr.msk.f32.mxu1 %vm564_vm0, %v565_v4 }
  0xe1   :  { %v130_v49 = vmax.f32 %v121_v47, 0.0 }
  0xe2   :  { %v125_v50 = vpop.f32.mrb[4].mxu0 }
  0xe3   :  { %v126_v51 = vadd.f32 %v365_v41, %v125_v50  ;;  %v421_v52 = vpop.f32.mrb[5].mxu0  ;;  %458 = vmatmul.mubr.f32.gmra.mrb[2].mxu1 %v130_v49 }
  0xe4   :  { %460 = vmatprep.mubr.msk.f32.mxu1 %vm564_vm0, %v565_v4 }
  0xe5   :  { %v131_v53 = vmax.f32 %v126_v51, 0.0 }
  0xe7   :  { %461 = vmatmul.mubr.f32.gmra.mrb[4].mxu1 %v131_v53 }
 0x1b2   :  { %v221_v58 = vpop.f32.mrb[0].mxu1 }
 0x1b3   :  { %v222_v59 = vadd.f32 %v369_v57, %v221_v58  ;;  %v456_v60 = vpop.f32.mrb[1].mxu1 }
 0x1b5   :  { %v235_v61 = vmax.f32 %v222_v59, 0.0 }
 0x1b6   :  { %v226_v62 = vpop.f32.mrb[2].mxu1 }
 0x1b7   :  { %v227_v63 = vadd.f32 %v369_v57, %v226_v62  ;;  %v459_v0 = vpop.f32.mrb[3].mxu1  ;;  %480 = vmatmul.mubr.msk.f32.vlgmr.msra.gmra.mrb[6].mxu0 %vm253_vm2, %v235_v61 }
 0x1b8   :  { %482 = vmatprep.mubr.msk.f32.mxu0 %vm564_vm0, %v565_v4 }
 0x1b9   :  { %v236_v1 = vmax.f32 %v227_v63, 0.0 }
 0x1ba   :  { %v231_v2 = vpop.f32.mrb[4].mxu1 }
 0x1bb   :  { %v232_v3 = vadd.f32 %v369_v57, %v231_v2  ;;  %v462_v5 = vpop.f32.mrb[5].mxu1  ;;  %483 = vmatmul.mubr.msk.f32.gmra.mrb[8].mxu0 %vm253_vm2, %v236_v1 }
 0x1bc   :  { %485 = vmatprep.mubr.msk.f32.mxu0 %vm564_vm0, %v565_v4 }
 0x1bd   :  { %v237_v6 = vmax.f32 %v232_v3, 0.0 }
 0x1bf   :  { %486 = vmatmul.mubr.msk.f32.gmra.mrb[10].mxu0 %vm253_vm2, %v237_v6 }
 0x28a   :  { %v329_v8 = vpop.f32.mrb[6].mxu0 }
 0x28b   :  { %v330_v9 = vadd.f32 %v370_v7, %v329_v8  ;;  %v481_v10 = vpop.f32.mrb[7].mxu0 }
 0x28d   :  { %533 = vtanh.f32 %v330_v9 }
 0x28e   :  { %v334_v11 = vpop.f32.mrb[8].mxu0 }
 0x28f   :  { %v335_v12 = vadd.f32 %v370_v7, %v334_v11  ;;  %v484_v13 = vpop.f32.mrb[9].mxu0 }
 0x291   :  { %535 = vtanh.f32 %v335_v12 }
 0x292   :  { %v339_v14 = vpop.f32.mrb[10].mxu0 }
 0x293   :  { %v340_v15 = vadd.f32 %v370_v7, %v339_v14  ;;  %v487_v16 = vpop.f32.mrb[11].mxu0 }
 0x295   :  { %537 = vtanh.f32 %v340_v15 }
 0x297   :  { %v534_v17 = vpop.eup %533 }
 0x298   :  { %346 = vst [vmem:[#allocation2] sm:$0xff] %v534_v17 }
 0x29b   :  { %v536_v4 = vpop.eup %535 }
 0x29c   :  { %347 = vst [vmem:[#allocation2 + $0x8] sm:$0xff] %v536_v4 }
 0x29f   :  { %v538_v18 = vpop.eup %537 }
 0x2a0   :  { %348 = vst [vmem:[#allocation2 + $0x10] sm:$0xff] %v538_v18 }
 0x2a1   :  { %550 = shalt.err (!%p547_p4)
}
 0x2a2   :  { %s551_s14 = scalar_lea.hbm %s758_s7, 384 }
 0x2a3   :  { %p552_p5 = scmp.ne.s32.totalorder %s758_s7, %s551_s14  ;;  %p555_p6 = scmp.lt.u32.totalorder %s551_s14, %s758_s7 }
 0x2a5   :  { %p557_p7 = pnand %p555_p6, %p552_p5 }
 0x2a7   :  { %560 = shalt.err (!%p557_p7)
}
 0x2a8   :  { %s567_s19 = smov 128   ;;  %s568_s20 = smov 8  }
 0x2a9   :  { %360 = dma.vmem_to_hbm [thread:$0]  %s355_s11, 384, %s758_s7, [#allocation3], %s567_s19, %s567_s19, %s568_s20  }
 0x2aa   :  { %561 = dma.done.wait [#allocation3], 384  }
 0x2ab   :  { %562 = vsyncadd [#allocation3], 4294966912 }
 0x2ac   :  { %364 = vsyncpa [#allocation3], 1 }

</bundles_post_ra>
